<compile_context>
chip_gen: v7x
topology: tpu7x:2x2x1
jax: 0.10.0
libtpu: 0.0.40
codegen_flags: <defaults>
</compile_context>

<pallas_src>
import jax
import jax.numpy as jnp
from jax import lax
from jax.experimental import pallas as pl
from jax.experimental.pallas import tpu as pltpu


LN_EPS = 1e-5  # PyTorch nn.LayerNorm default


def _fusion_kernel(ssh_ref, sst_ref, w1_ref, w2_ref, b_ref, avg_ref,
                   gamma_ref, beta_ref, out_ref):
    # Folded fusion linear over both modalities (virtual concat):
    #   fused[i, g*F + c] corresponds to logical row (i*pack + g), feature c.
    fused = (jnp.dot(ssh_ref[...], w1_ref[...], preferred_element_type=jnp.float32)
             + jnp.dot(sst_ref[...], w2_ref[...], preferred_element_type=jnp.float32)
             + b_ref[...])

    # Group-wise LayerNorm over each logical F-wide feature group via a
    # block-diagonal averaging matmul (avg_ref[j, j'] = 1/F iff same group).
    # Keeps the whole epilogue lane-dense; biased variance like PyTorch.
    mean = jnp.dot(fused, avg_ref[...], preferred_element_type=jnp.float32)
    centered = fused - mean
    var = jnp.dot(centered * centered, avg_ref[...],
                  preferred_element_type=jnp.float32)
    norm = centered * lax.rsqrt(var + LN_EPS)          # rsqrt -> EUP slot
    y = norm * gamma_ref[...] + beta_ref[...]          # implicit (1, pF) bcast
    out_ref[...] = jnp.maximum(y, 0.0).astype(out_ref.dtype)


def _block_diag(w, reps):
    """[k, f] -> block-diagonal [reps*k, reps*f] with `w` repeated on the diagonal."""
    if reps == 1:
        return w
    k, f = w.shape
    eye = jnp.eye(reps, dtype=w.dtype)
    return (eye[:, None, :, None] * w[None, :, None, :]).reshape(reps * k, reps * f)


def multimodal_fusion(ssh_feat, sst_feat, params, *, row_tile=1024,
                      input_dtype=jnp.float32):
    """ssh_feat: [..., ssh_dim], sst_feat: [..., sst_dim] -> [..., fusion_dim] (f32)."""
    ssh_dim = ssh_feat.shape[-1]
    sst_dim = sst_feat.shape[-1]
    f_dim = params["b_fuse"].shape[-1]

    lead = ssh_feat.shape[:-1]
    n = 1
    for d in lead:
        n *= d

    # ---- fold the two projection Linears into the fusion Linear (exact in f32) ----
    w_f1 = params["w_fuse"][:f_dim, :]                  # [F, F]
    w_f2 = params["w_fuse"][f_dim:, :]                  # [F, F]
    w1 = params["w_ssh"] @ w_f1                         # [ssh_dim, F]
    w2 = params["w_sst"] @ w_f2                         # [sst_dim, F]
    b = params["b_ssh"] @ w_f1 + params["b_sst"] @ w_f2 + params["b_fuse"]  # [F]

    # ---- lane-dense row packing: `pack` logical rows per 128-lane output row ----
    pack = 128 // f_dim if (f_dim < 128 and 128 % f_dim == 0) else 1
    rt_p = max(row_tile // pack, 16)
    rt_p = ((rt_p + 15) // 16) * 16          # sublane-friendly for f32 and bf16
    row_tile = rt_p * pack

    n_pad = pl.cdiv(n, row_tile) * row_tile
    grid = (n_pad // row_tile,)

    def pack_rows(x2d, d):
        if n_pad > n:
            x2d = jnp.concatenate(
                [x2d, jnp.zeros((n_pad - n, d), x2d.dtype)], axis=0)
        # contiguous row-major reshape: zero-cost layout change
        return x2d.reshape(n_pad // pack, pack * d)

    ssh_p = pack_rows(ssh_feat.reshape(n, ssh_dim).astype(input_dtype), ssh_dim)
    sst_p = pack_rows(sst_feat.reshape(n, sst_dim).astype(input_dtype), sst_dim)

    w1_bd = _block_diag(w1, pack).astype(input_dtype)     # [pack*ssh_dim, pack*F]
    w2_bd = _block_diag(w2, pack).astype(input_dtype)     # [pack*sst_dim, pack*F]
    avg = _block_diag(jnp.full((f_dim, f_dim), 1.0 / f_dim, jnp.float32), pack)
    b_t = jnp.tile(b, pack)[None, :].astype(jnp.float32)               # [1, pack*F]
    gamma_t = jnp.tile(params["ln_gamma"], pack)[None, :].astype(jnp.float32)
    beta_t = jnp.tile(params["ln_beta"], pack)[None, :].astype(jnp.float32)

    pf = pack * f_dim
    row_spec = lambda d: pl.BlockSpec((rt_p, d), lambda i: (i, 0))
    full_spec = lambda shape: pl.BlockSpec(shape, lambda i: (0, 0))

    out = pl.pallas_call(
        _fusion_kernel,
        out_shape=jax.ShapeDtypeStruct((n_pad // pack, pf), jnp.float32),
        grid_spec=pltpu.PrefetchScalarGridSpec(
            num_scalar_prefetch=0,
            grid=grid,
            in_specs=[
                row_spec(pack * ssh_dim),            # packed ssh rows
                row_spec(pack * sst_dim),            # packed sst rows
                full_spec((pack * ssh_dim, pf)),     # folded + block-diag W1
                full_spec((pack * sst_dim, pf)),     # folded + block-diag W2
                full_spec((1, pf)),                  # folded bias (tiled)
                full_spec((pf, pf)),                 # group-averaging matrix
                full_spec((1, pf)),                  # LN gamma (tiled)
                full_spec((1, pf)),                  # LN beta (tiled)
            ],
            out_specs=row_spec(pf),
        ),
        compiler_params=pltpu.CompilerParams(
            dimension_semantics=("parallel",)),      # megacore / v7x dual-TC
    )(ssh_p, sst_p, w1_bd, w2_bd, b_t, avg, gamma_t, beta_t)

    # Un-pack rows (contiguous reshape), drop padding, restore leading shape.
    out = out.reshape(n_pad, f_dim)[:n]
    return out.reshape(*lead, f_dim)


def init_params(key, ssh_dim, sst_dim, fusion_dim):
    """Deterministic synthetic init (shapes match the PyTorch module)."""
    ks = jax.random.split(key, 6)

    def linear(kw, kb, fan_in, fan_out):
        bound = 1.0 / (fan_in ** 0.5)
        w = jax.random.uniform(kw, (fan_in, fan_out), jnp.float32, -bound, bound)
        b = jax.random.uniform(kb, (fan_out,), jnp.float32, -bound, bound)
        return w, b

    w_ssh, b_ssh = linear(ks[0], ks[1], ssh_dim, fusion_dim)
    w_sst, b_sst = linear(ks[2], ks[3], sst_dim, fusion_dim)
    w_fuse, b_fuse = linear(ks[4], ks[5], 2 * fusion_dim, fusion_dim)
    return {
        "w_ssh": w_ssh, "b_ssh": b_ssh,
        "w_sst": w_sst, "b_sst": b_sst,
        "w_fuse": w_fuse, "b_fuse": b_fuse,
        "ln_gamma": jnp.ones((fusion_dim,), jnp.float32),
        "ln_beta": jnp.zeros((fusion_dim,), jnp.float32),
    }


def _reference(ssh_feat, sst_feat, params):
    """Pure-JAX reference mirroring the PyTorch forward."""
    ssh_p = ssh_feat @ params["w_ssh"] + params["b_ssh"]
    sst_p = sst_feat @ params["w_sst"] + params["b_sst"]
    combined = jnp.concatenate([ssh_p, sst_p], axis=-1)
    fused = combined @ params["w_fuse"] + params["b_fuse"]
    mean = jnp.mean(fused, axis=-1, keepdims=True)
    var = jnp.mean((fused - mean) ** 2, axis=-1, keepdims=True)
    norm = (fused - mean) / jnp.sqrt(var + LN_EPS)
    return jnp.maximum(norm * params["ln_gamma"] + params["ln_beta"], 0.0)


if __name__ == "__main__":
    key = jax.random.PRNGKey(0)
    k_ssh, k_sst, k_params = jax.random.split(key, 3)

    # Small shapes implied by the module: [B, S, dim] features.
    B, S = 2, 8
    ssh_dim, sst_dim, fusion_dim = 32, 24, 32
    ssh_feat = jax.random.normal(k_ssh, (B, S, ssh_dim), jnp.float32)
    sst_feat = jax.random.normal(k_sst, (B, S, sst_dim), jnp.float32)
    params = init_params(k_params, ssh_dim, sst_dim, fusion_dim)

    out = jax.block_until_ready(multimodal_fusion(ssh_feat, sst_feat, params))
    ref = _reference(ssh_feat, sst_feat, params)
    assert out.shape == (B, S, fusion_dim)
    assert jnp.allclose(out, ref, atol=1e-4, rtol=1e-4), "f32 mismatch vs reference"

    # Larger, non-tile-divisible row count: exercises cdiv + padding + multi-step grid.
    B2, S2 = 3, 700  # n = 2100 rows -> padded to 3072 -> 3 grid steps
    ssh2 = jax.random.normal(jax.random.PRNGKey(1), (B2, S2, ssh_dim), jnp.float32)
    sst2 = jax.random.normal(jax.random.PRNGKey(2), (B2, S2, sst_dim), jnp.float32)
    out2 = jax.block_until_ready(multimodal_fusion(ssh2, sst2, params))
    ref2 = _reference(ssh2, sst2, params)
    assert out2.shape == (B2, S2, fusion_dim)
    assert jnp.allclose(out2, ref2, atol=1e-4, rtol=1e-4), "f32 padded mismatch"

    # bf16 streaming of rows + folded weights (halves HBM traffic; LN math stays f32).
    out3 = jax.block_until_ready(
        multimodal_fusion(ssh2, sst2, params, input_dtype=jnp.bfloat16))
    assert jnp.allclose(out3, ref2, atol=5e-2, rtol=5e-2), "bf16 mismatch"

    print("KERNEL_OK")
</pallas_src>

<mosaic_0001>
module attributes {stable_mosaic.version = 11 : i64} {
  func.func @_fusion_kernel(%arg0: i32, %arg1: memref<256x128xf32, #tpu.memory_space<vmem>>, %arg2: memref<256x96xf32, #tpu.memory_space<vmem>>, %arg3: memref<128x128xf32, #tpu.memory_space<vmem>>, %arg4: memref<96x128xf32, #tpu.memory_space<vmem>>, %arg5: memref<1x128xf32, #tpu.memory_space<vmem>>, %arg6: memref<128x128xf32, #tpu.memory_space<vmem>>, %arg7: memref<1x128xf32, #tpu.memory_space<vmem>>, %arg8: memref<1x128xf32, #tpu.memory_space<vmem>>, %arg9: memref<256x128xf32, #tpu.memory_space<vmem>>) attributes {dimension_semantics = [#tpu.dimension_semantics<parallel>], iteration_bounds = array<i64: 1>, scalar_prefetch = 0 : i64, scratch_operands = 0 : i64, tpu.core_type = #tpu.core_type<tc>, window_params = [{transform_indices = @transform_0, window_bounds = array<i64: 256, 128>}, {transform_indices = @transform_1, window_bounds = array<i64: 256, 96>}, {pipeline_mode = #tpu.pipeline_mode<synchronous>, transform_indices = @transform_2, window_bounds = array<i64: 128, 128>}, {pipeline_mode = #tpu.pipeline_mode<synchronous>, transform_indices = @transform_3, window_bounds = array<i64: 96, 128>}, {pipeline_mode = #tpu.pipeline_mode<synchronous>, transform_indices = @transform_4, window_bounds = array<i64: 1, 128>}, {pipeline_mode = #tpu.pipeline_mode<synchronous>, transform_indices = @transform_5, window_bounds = array<i64: 128, 128>}, {pipeline_mode = #tpu.pipeline_mode<synchronous>, transform_indices = @transform_6, window_bounds = array<i64: 1, 128>}, {pipeline_mode = #tpu.pipeline_mode<synchronous>, transform_indices = @transform_7, window_bounds = array<i64: 1, 128>}, {transform_indices = @transform_8, window_bounds = array<i64: 256, 128>}]} {
    %c0 = arith.constant 0 : index
    %c0_0 = arith.constant 0 : index
    %0 = vector.load %arg1[%c0, %c0_0] : memref<256x128xf32, #tpu.memory_space<vmem>>, vector<256x128xf32>
    %c0_1 = arith.constant 0 : index
    %c0_2 = arith.constant 0 : index
    %1 = vector.load %arg3[%c0_1, %c0_2] : memref<128x128xf32, #tpu.memory_space<vmem>>, vector<128x128xf32>
    %cst = arith.constant dense<0.000000e+00> : vector<256x128xf32>
    %2 = tpu.matmul %0, %1, %cst {dimension_numbers = #tpu.dot_dimension_numbers<[1], [0], [0], [1], [0, 0, 1, 1], [], []>} : vector<256x128xf32>, vector<128x128xf32>, vector<256x128xf32> -> vector<256x128xf32>
    %c0_3 = arith.constant 0 : index
    %c0_4 = arith.constant 0 : index
    %3 = vector.load %arg2[%c0_3, %c0_4] : memref<256x96xf32, #tpu.memory_space<vmem>>, vector<256x96xf32>
    %c0_5 = arith.constant 0 : index
    %c0_6 = arith.constant 0 : index
    %4 = vector.load %arg4[%c0_5, %c0_6] : memref<96x128xf32, #tpu.memory_space<vmem>>, vector<96x128xf32>
    %cst_7 = arith.constant dense<0.000000e+00> : vector<256x128xf32>
    %5 = tpu.matmul %3, %4, %cst_7 {dimension_numbers = #tpu.dot_dimension_numbers<[1], [0], [0], [1], [0, 0, 1, 1], [], []>} : vector<256x96xf32>, vector<96x128xf32>, vector<256x128xf32> -> vector<256x128xf32>
    %6 = arith.addf %2, %5 : vector<256x128xf32>
    %c0_8 = arith.constant 0 : index
    %c0_9 = arith.constant 0 : index
    %7 = vector.load %arg5[%c0_8, %c0_9] : memref<1x128xf32, #tpu.memory_space<vmem>>, vector<1x128xf32>
    %8 = vector.broadcast %7 : vector<1x128xf32> to vector<256x128xf32>
    %9 = arith.addf %6, %8 : vector<256x128xf32>
    %c0_10 = arith.constant 0 : index
    %c0_11 = arith.constant 0 : index
    %10 = vector.load %arg6[%c0_10, %c0_11] : memref<128x128xf32, #tpu.memory_space<vmem>>, vector<128x128xf32>
    %cst_12 = arith.constant dense<0.000000e+00> : vector<256x128xf32>
    %11 = tpu.matmul %9, %10, %cst_12 {dimension_numbers = #tpu.dot_dimension_numbers<[1], [0], [0], [1], [0, 0, 1, 1], [], []>} : vector<256x128xf32>, vector<128x128xf32>, vector<256x128xf32> -> vector<256x128xf32>
    %12 = arith.subf %9, %11 : vector<256x128xf32>
    %13 = arith.mulf %12, %12 : vector<256x128xf32>
    %c0_13 = arith.constant 0 : index
    %c0_14 = arith.constant 0 : index
    %14 = vector.load %arg6[%c0_13, %c0_14] : memref<128x128xf32, #tpu.memory_space<vmem>>, vector<128x128xf32>
    %cst_15 = arith.constant dense<0.000000e+00> : vector<256x128xf32>
    %15 = tpu.matmul %13, %14, %cst_15 {dimension_numbers = #tpu.dot_dimension_numbers<[1], [0], [0], [1], [0, 0, 1, 1], [], []>} : vector<256x128xf32>, vector<128x128xf32>, vector<256x128xf32> -> vector<256x128xf32>
    %cst_16 = arith.constant 9.99999974E-6 : f32
    %16 = vector.broadcast %cst_16 : f32 to vector<256x128xf32>
    %17 = arith.addf %15, %16 : vector<256x128xf32>
    %18 = math.rsqrt %17 : vector<256x128xf32>
    %19 = arith.mulf %12, %18 : vector<256x128xf32>
    %c0_17 = arith.constant 0 : index
    %c0_18 = arith.constant 0 : index
    %20 = vector.load %arg7[%c0_17, %c0_18] : memref<1x128xf32, #tpu.memory_space<vmem>>, vector<1x128xf32>
    %21 = vector.broadcast %20 : vector<1x128xf32> to vector<256x128xf32>
    %22 = arith.mulf %19, %21 : vector<256x128xf32>
    %c0_19 = arith.constant 0 : index
    %c0_20 = arith.constant 0 : index
    %23 = vector.load %arg8[%c0_19, %c0_20] : memref<1x128xf32, #tpu.memory_space<vmem>>, vector<1x128xf32>
    %24 = vector.broadcast %23 : vector<1x128xf32> to vector<256x128xf32>
    %25 = arith.addf %22, %24 : vector<256x128xf32>
    %cst_21 = arith.constant 0.000000e+00 : f32
    %26 = vector.broadcast %cst_21 : f32 to vector<256x128xf32>
    %27 = arith.maximumf %25, %26 : vector<256x128xf32>
    %c0_22 = arith.constant 0 : index
    %c0_23 = arith.constant 0 : index
    %28 = vector.load %arg9[%c0_22, %c0_23] : memref<256x128xf32, #tpu.memory_space<vmem>>, vector<256x128xf32>
    tpu.vector_store %arg9[%c0_22, %c0_23], %27 {strides = array<i32>} : memref<256x128xf32, #tpu.memory_space<vmem>>, vector<256x128xf32>,
    return
  }
  func.func @transform_0(%arg0: i32) -> (i32, i32) {
    %c0_i32 = arith.constant 0 : i32
    %c0_i32_0 = arith.constant 0 : i32
    return %arg0, %c0_i32 : i32, i32
  }
  func.func @transform_1(%arg0: i32) -> (i32, i32) {
    %c0_i32 = arith.constant 0 : i32
    %c0_i32_0 = arith.constant 0 : i32
    return %arg0, %c0_i32 : i32, i32
  }
  func.func @transform_2(%arg0: i32) -> (i32, i32) {
    %c0_i32 = arith.constant 0 : i32
    %c0_i32_0 = arith.constant 0 : i32
    %c0_i32_1 = arith.constant 0 : i32
    return %c0_i32, %c0_i32_0 : i32, i32
  }
  func.func @transform_3(%arg0: i32) -> (i32, i32) {
    %c0_i32 = arith.constant 0 : i32
    %c0_i32_0 = arith.constant 0 : i32
    %c0_i32_1 = arith.constant 0 : i32
    return %c0_i32, %c0_i32_0 : i32, i32
  }
  func.func @transform_4(%arg0: i32) -> (i32, i32) {
    %c0_i32 = arith.constant 0 : i32
    %c0_i32_0 = arith.constant 0 : i32
    %c0_i32_1 = arith.constant 0 : i32
    return %c0_i32, %c0_i32_0 : i32, i32
  }
  func.func @transform_5(%arg0: i32) -> (i32, i32) {
    %c0_i32 = arith.constant 0 : i32
    %c0_i32_0 = arith.constant 0 : i32
    %c0_i32_1 = arith.constant 0 : i32
    return %c0_i32, %c0_i32_0 : i32, i32
  }
  func.func @transform_6(%arg0: i32) -> (i32, i32) {
    %c0_i32 = arith.constant 0 : i32
    %c0_i32_0 = arith.constant 0 : i32
    %c0_i32_1 = arith.constant 0 : i32
    return %c0_i32, %c0_i32_0 : i32, i32
  }
  func.func @transform_7(%arg0: i32) -> (i32, i32) {
    %c0_i32 = arith.constant 0 : i32
    %c0_i32_0 = arith.constant 0 : i32
    %c0_i32_1 = arith.constant 0 : i32
    return %c0_i32, %c0_i32_0 : i32, i32
  }
  func.func @transform_8(%arg0: i32) -> (i32, i32) {
    %c0_i32 = arith.constant 0 : i32
    %c0_i32_0 = arith.constant 0 : i32
    return %arg0, %c0_i32 : i32, i32
  }
}

</mosaic_0001>

<bundles_post_ra>
// kernel: tpu_custom_call.1
= control target key start
LH: loop header
LB: loop body
LE: loop exit
PB: predicated region body
PF: predicated region fallthrough
CT: control target
= control target key end

     0   :  { %13 = vsyncpa [#allocation3], 0  ;;  %s3164_s0 = inlined_call_operand.vmem [shape: f32[256,128], index: 0, kind: input, shape index: {}]   ;;  %s3165_s1 = inlined_call_operand.vmem [shape: f32[256,96], index: 1, kind: input, shape index: {}]   ;;  %s3166_s2 = inlined_call_operand.vmem [shape: f32[128,128], index: 2, kind: input, shape index: {}]   ;;  %s3167_s3 = inlined_call_operand.hbm [shape: f32[96,128], index: 3, kind: input, shape index: {}]   ;;  %s3168_s4 = inlined_call_operand.vmem [shape: f32[1,128], index: 4, kind: input, shape index: {}]   ;;  %s3169_s5 = inlined_call_operand.hbm [shape: f32[128,128], index: 5, kind: input, shape index: {}]   ;;  %s3170_s6 = inlined_call_operand.vmem [shape: f32[1,128], index: 6, kind: input, shape index: {}]   ;;  %s3171_s7 = inlined_call_operand.vmem [shape: f32[1,128], index: 7, kind: input, shape index: {}]   ;;  %s3172_s8 = inlined_call_operand.hbm [shape: f32[256,128], index: 8, kind: output, shape index: {}]  }
   0x1   :  { %14 = vsyncpa [#allocation6], 0 }
   0x2   :  { %15 = vsyncpa [#allocation4], 0  ;;  %s2334_s27 = smov [#allocation2]   ;;  %s2262_s9 = scalar_lea.hbm %s3167_s3, 1536 }
   0x3   :  { %s27_s28 = sshll.u32 %s2334_s27, 4  ;;  %p2263_p0 = scmp.ne.s32.totalorder %s3167_s3, %s2262_s9  ;;  %s28_s28 = int_to_ptr.vmem [resolvable:$true] %s27_s28 }
   0x4   :  { %p2266_p1 = scmp.lt.u32.totalorder %s2262_s9, %s3167_s3 }
   0x6   :  { %p2268_p2 = pnand %p2266_p1, %p2263_p0 }
   0x8   :  { %2271 = shalt.err (!%p2268_p2)
}
   0x9   :  { %s2272_s14 = scalar_lea.vmem %s28_s28, 1536  ;;  %p2277_p4 = scmp.lt.s32.totalorder %s28_s28, %s28_s28 }
   0xa   :  { %p2273_p3 = scmp.ne.s32.totalorder %s28_s28, %s2272_s14  ;;  %p2278_p5 = scmp.lt.s32.totalorder %s2272_s14, %s2272_s14 }
   0xc   :  { %p2279_p6 = por %p2278_p5, %p2277_p4 }
   0xe   :  { %p2280_p7 = pnand %p2279_p6, %p2273_p3 }
  0x10   :  { %2283 = shalt.err (!%p2280_p7)
}
  0x11   :  { %s2335_s15 = smov 128   ;;  %s2336_s16 = smov 8  }
  0x12   :  { %33 = dma.hbm_to_vmem [thread:$0]  %s3167_s3, 1536, %s28_s28, [#allocation3], %s2335_s15, %s2335_s15, %s2336_s16  }
  0x13   :  { %s2337_s19 = smov [#allocation5]   ;;  %s2284_s23 = scalar_lea.hbm %s3169_s5, 2048 }
  0x14   :  { %s41_s20 = sshll.u32 %s2337_s19, 4  ;;  %p2285_p8 = scmp.ne.s32.totalorder %s3169_s5, %s2284_s23  ;;  %s42_s20 = int_to_ptr.vmem [resolvable:$true] %s41_s20 }
  0x15   :  { %p2288_p9 = scmp.lt.u32.totalorder %s2284_s23, %s3169_s5 }
  0x17   :  { %p2290_p10 = pnand %p2288_p9, %p2285_p8 }
  0x19   :  { %2293 = shalt.err (!%p2290_p10)
}
  0x1a   :  { %s2294_s29 = scalar_lea.vmem %s42_s20, 2048  ;;  %p2299_p12 = scmp.lt.s32.totalorder %s42_s20, %s42_s20 }
  0x1b   :  { %p2295_p11 = scmp.ne.s32.totalorder %s42_s20, %s2294_s29  ;;  %p2300_p13 = scmp.lt.s32.totalorder %s2294_s29, %s2294_s29 }
  0x1d   :  { %p2301_p0 = por %p2300_p13, %p2299_p12 }
  0x1f   :  { %p2302_p1 = pnand %p2301_p0, %p2295_p11 }
  0x21   :  { %2305 = shalt.err (!%p2302_p1)
}
  0x22   :  { %47 = dma.hbm_to_vmem [thread:$0]  %s3169_s5, 2048, %s42_s20, [#allocation6], %s2335_s15, %s2335_s15, %s2336_s16  }
  0x23   :  { %2328 = dma.done.wait [#allocation3], 1536  }
  0x24   :  { %2329 = vsyncadd [#allocation3], 4294965760 }
  0x25   :  { %2330 = dma.done.wait [#allocation6], 2048  }
  0x26   :  { %2331 = vsyncadd [#allocation6], 4294965248  ;;  %v138_v0 = vld [vmem:[#allocation2] sm:$0xff]  ;;  %v139_v1 = vld [vmem:[#allocation2 + $0x8] sm:$0xff]  ;;  %vm150_vm0 = vcmask 785408  }
  0x27   :  { %v140_v2 = vld [vmem:[#allocation2 + $0x10] sm:$0xff]  ;;  %v2025_v3 = vpack.c.bf16 %v139_v1, %v138_v0  ;;  %v141_v4 = vld [vmem:[#allocation2 + $0x18] sm:$0xff]  ;;  %v142_v6 = vld [vmem:[#allocation2 + $0x20] sm:$0xff] }
  0x28   :  { %v2029_v5 = vpack.c.bf16 %v141_v4, %v140_v2  ;;  %v143_v7 = vld [vmem:[#allocation2 + $0x28] sm:$0xff]  ;;  %v106_v8 = vld [vmem:[%s3165_s1] sm:$0xff]  ;;  %v144_v10 = vld [vmem:[#allocation2 + $0x30] sm:$0xff] }
  0x29   :  { %2026 = vmatprep.subr.bf16.mxu0 %v2025_v3  ;;  %v2033_v9 = vpack.c.bf16 %v143_v7, %v142_v6  ;;  %1737 = vmatprep.mubr.msk.f32.mxu0 %vm150_vm0, %v106_v8  ;;  %v145_v11 = vld [vmem:[#allocation2 + $0x38] sm:$0xff]  ;;  %v146_v13 = vld [vmem:[#allocation2 + $0x40] sm:$0xff]  ;;  %v147_v14 = vld [vmem:[#allocation2 + $0x48] sm:$0xff] }
  0x2a   :  { %2028 = vmatpush3.bf16.msra.mxu0 %v2025_v3  ;;  %v2037_v12 = vpack.c.bf16 %v145_v11, %v144_v10  ;;  %v2041_v15 = vpack.c.bf16 %v147_v14, %v146_v13  ;;  %v148_v16 = vld [vmem:[#allocation2 + $0x50] sm:$0xff]  ;;  %v149_v17 = vld [vmem:[#allocation2 + $0x58] sm:$0xff]  ;;  %v90_v19 = vld [vmem:[%s3166_s2] sm:$0xff] }
  0x2b   :  { %2030 = vmatprep.subr.bf16.mxu0 %v2029_v5  ;;  %v2045_v18 = vpack.c.bf16 %v149_v17, %v148_v16  ;;  %v91_v20 = vld [vmem:[%s3166_s2 + $0x8] sm:$0xff]  ;;  %v92_v22 = vld [vmem:[%s3166_s2 + $0x10] sm:$0xff]  ;;  %v93_v23 = vld [vmem:[%s3166_s2 + $0x18] sm:$0xff] }
  0x2c   :  { %v2049_v21 = vpack.c.bf16 %v91_v20, %v90_v19  ;;  %v107_v24 = vld [vmem:[%s3165_s1 + $0x8] sm:$0xff]  ;;  %v108_v25 = vld [vmem:[%s3165_s1 + $0x10] sm:$0xff]  ;;  %v2053_v26 = vpack.c.bf16 %v93_v23, %v92_v22  ;;  %v94_v27 = vld [vmem:[%s3166_s2 + $0x20] sm:$0xff] }
  0x2d   :  { %v95_v28 = vld [vmem:[%s3166_s2 + $0x28] sm:$0xff]  ;;  %v109_v29 = vld [vmem:[%s3165_s1 + $0x18] sm:$0xff]  ;;  %v110_v30 = vld [vmem:[%s3165_s1 + $0x20] sm:$0xff] }
  0x2e   :  { %2032 = vmatpush3.bf16.msra.mxu0 %v2029_v5  ;;  %v2057_v31 = vpack.c.bf16 %v95_v28, %v94_v27  ;;  %v96_v32 = vld [vmem:[%s3166_s2 + $0x30] sm:$0xff]  ;;  %v97_v33 = vld [vmem:[%s3166_s2 + $0x38] sm:$0xff]  ;;  %v736_v34 = vld [vmem:[#allocation5] sm:$0xff] }
  0x2f   :  { %2034 = vmatprep.subr.bf16.mxu0 %v2033_v9  ;;  %v737_v35 = vld [vmem:[#allocation5 + $0x8] sm:$0xff]  ;;  %v738_v38 = vld [vmem:[#allocation5 + $0x10] sm:$0xff]  ;;  %v739_v39 = vld [vmem:[#allocation5 + $0x18] sm:$0xff]  ;;  %v2061_v41 = vpack.c.bf16 %v97_v33, %v96_v32 }
  0x30   :  { %v111_v36 = vld [vmem:[%s3165_s1 + $0x28] sm:$0xff]  ;;  %v2461_v37 = vpack.c.bf16 %v737_v35, %v736_v34  ;;  %v112_v40 = vld [vmem:[%s3165_s1 + $0x30] sm:$0xff]  ;;  %v98_v42 = vld [vmem:[%s3166_s2 + $0x40] sm:$0xff]  ;;  %v2474_v44 = vpack.c.bf16 %v739_v39, %v738_v38 }
  0x31   :  { %v99_v43 = vld [vmem:[%s3166_s2 + $0x48] sm:$0xff]  ;;  %v113_v45 = vld [vmem:[%s3165_s1 + $0x38] sm:$0xff]  ;;  %v740_v46 = vld [vmem:[#allocation5 + $0x20] sm:$0xff] }
  0x32   :  { %2036 = vmatpush3.bf16.msra.mxu0 %v2033_v9  ;;  %2145 = vmatprep.subr.bf16.mxu1 %v2461_v37  ;;  %v741_v47 = vld [vmem:[#allocation5 + $0x28] sm:$0xff]  ;;  %v114_v48 = vld [vmem:[%s3165_s1 + $0x40] sm:$0xff]  ;;  %v2065_v49 = vpack.c.bf16 %v99_v43, %v98_v42  ;;  %v100_v50 = vld [vmem:[%s3166_s2 + $0x50] sm:$0xff] }
  0x33   :  { %2038 = vmatprep.subr.bf16.mxu0 %v2037_v12  ;;  %2153 = vmatpush3.bf16.msra.mxu1 %v2461_v37  ;;  %v101_v51 = vld [vmem:[%s3166_s2 + $0x58] sm:$0xff]  ;;  %v2492_v52 = vpack.c.bf16 %v741_v47, %v740_v46  ;;  %v115_v53 = vld [vmem:[%s3165_s1 + $0x48] sm:$0xff]  ;;  %v742_v54 = vld [vmem:[#allocation5 + $0x30] sm:$0xff] }
  0x34   :  { %2146 = vmatprep.subr.bf16.mxu1 %v2474_v44  ;;  %v743_v55 = vld [vmem:[#allocation5 + $0x38] sm:$0xff]  ;;  %v116_v56 = vld [vmem:[%s3165_s1 + $0x50] sm:$0xff]  ;;  %v2069_v57 = vpack.c.bf16 %v101_v51, %v100_v50  ;;  %v102_v58 = vld [vmem:[%s3166_s2 + $0x60] sm:$0xff] }
  0x35   :  { %v103_v59 = vld [vmem:[%s3166_s2 + $0x68] sm:$0xff]  ;;  %v2510_v60 = vpack.c.bf16 %v743_v55, %v742_v54  ;;  %v117_v61 = vld [vmem:[%s3165_s1 + $0x58] sm:$0xff]  ;;  %v744_v62 = vld [vmem:[#allocation5 + $0x40] sm:$0xff] }
  0x36   :  { %2040 = vmatpush3.bf16.msra.mxu0 %v2037_v12  ;;  %v745_v63 = vld [vmem:[#allocation5 + $0x48] sm:$0xff]  ;;  %v118_v0 = vld [vmem:[%s3165_s1 + $0x60] sm:$0xff]  ;;  %v2073_v1 = vpack.c.bf16 %v103_v59, %v102_v58  ;;  %v104_v2 = vld [vmem:[%s3166_s2 + $0x70] sm:$0xff] }
  0x37   :  { %2042 = vmatprep.subr.bf16.mxu0 %v2041_v15  ;;  %2154 = vmatpush3.bf16.msra.mxu1 %v2474_v44  ;;  %v105_v3 = vld [vmem:[%s3166_s2 + $0x78] sm:$0xff]  ;;  %v2528_v4 = vpack.c.bf16 %v745_v63, %v744_v62  ;;  %v119_v5 = vld [vmem:[%s3165_s1 + $0x68] sm:$0xff]  ;;  %v746_v6 = vld [vmem:[#allocation5 + $0x50] sm:$0xff] }
  0x38   :  { %2147 = vmatprep.subr.bf16.mxu1 %v2492_v52  ;;  %v747_v7 = vld [vmem:[#allocation5 + $0x58] sm:$0xff]  ;;  %v120_v8 = vld [vmem:[%s3165_s1 + $0x70] sm:$0xff]  ;;  %v2077_v9 = vpack.c.bf16 %v105_v3, %v104_v2  ;;  %v748_v12 = vld [vmem:[#allocation5 + $0x60] sm:$0xff] }
  0x39   :  { %v2540_v10 = vpack.c.bf16 %v747_v7, %v746_v6  ;;  %v121_v11 = vld [vmem:[%s3165_s1 + $0x78] sm:$0xff]  ;;  %v749_v13 = vld [vmem:[#allocation5 + $0x68] sm:$0xff]  ;;  %v122_v14 = vld [vmem:[%s3165_s1 + $0x80] sm:$0xff] }
  0x3a   :  { %2044 = vmatpush3.bf16.msra.mxu0 %v2041_v15  ;;  %v2552_v15 = vpack.c.bf16 %v749_v13, %v748_v12  ;;  %v750_v16 = vld [vmem:[#allocation5 + $0x70] sm:$0xff]  ;;  %v751_v17 = vld [vmem:[#allocation5 + $0x78] sm:$0xff]  ;;  %v126_v22 = vld [vmem:[%s3165_s1 + $0xa0] sm:$0xff] }
  0x3b   :  { %2046 = vmatprep.subr.bf16.mxu0 %v2045_v18  ;;  %2155 = vmatpush3.bf16.msra.mxu1 %v2492_v52  ;;  %v124_v19 = vld [vmem:[%s3165_s1 + $0x90] sm:$0xff]  ;;  %v2564_v20 = vpack.c.bf16 %v751_v17, %v750_v16  ;;  %v127_v23 = vld [vmem:[%s3165_s1 + $0xa8] sm:$0xff]  ;;  %v137_v33 = vld [vmem:[%s3165_s1 + $0xf8] sm:$0xff] }
  0x3c   :  { %2148 = vmatprep.subr.bf16.mxu1 %v2510_v60  ;;  %v131_v27 = vld [vmem:[%s3165_s1 + $0xc8] sm:$0xff]  ;;  %v132_v28 = vld [vmem:[%s3165_s1 + $0xd0] sm:$0xff]  ;;  %v58_v34 = vld [vmem:[%s3164_s0] sm:$0xff] }
  0x3d   :  { %v136_v32 = vld [vmem:[%s3165_s1 + $0xf0] sm:$0xff]  ;;  %v59_v35 = vld [vmem:[%s3164_s0 + $0x8] sm:$0xff]  ;;  %v61_v38 = vld [vmem:[%s3164_s0 + $0x18] sm:$0xff] }
  0x3e   :  { %2048 = vmatpush3.bf16.msra.mxu0 %v2045_v18  ;;  %v123_v18 = vld [vmem:[%s3165_s1 + $0x88] sm:$0xff]  ;;  %v62_v39 = vld [vmem:[%s3164_s0 + $0x20] sm:$0xff]  ;;  %v65_v42 = vld [vmem:[%s3164_s0 + $0x38] sm:$0xff] }
  0x3f   :  { %2050 = vmatprep.subr.bf16.mxu0 %v2049_v21  ;;  %2156 = vmatpush3.bf16.msra.mxu1 %v2510_v60  ;;  %v66_v43 = vld [vmem:[%s3164_s0 + $0x40] sm:$0xff]  ;;  %v68_v46 = vld [vmem:[%s3164_s0 + $0x50] sm:$0xff]  ;;  %v69_v47 = vld [vmem:[%s3164_s0 + $0x58] sm:$0xff] }
  0x40   :  { %2149 = vmatprep.subr.bf16.mxu1 %v2528_v4  ;;  %v72_v50 = vld [vmem:[%s3164_s0 + $0x70] sm:$0xff]  ;;  %v73_v51 = vld [vmem:[%s3164_s0 + $0x78] sm:$0xff]  ;;  %v75_v54 = vld [vmem:[%s3164_s0 + $0x88] sm:$0xff] }
  0x41   :  { %1738 = vmatmul.mubr.msk.f32.vlgmr.msra.gmra.mrb[0].mxu0 %vm150_vm0, %v107_v24  ;;  %v128_v24 = vld [vmem:[%s3165_s1 + $0xb0] sm:$0xff]  ;;  %v79_v58 = vld [vmem:[%s3164_s0 + $0xa8] sm:$0xff]  ;;  %v82_v62 = vld [vmem:[%s3164_s0 + $0xc0] sm:$0xff] }
  0x42   :  { %2052 = vmatpush3.bf16.msra.mxu0 %v2049_v21  ;;  %1740 = vmatprep.mubr.msk.f32.mxu0 %vm150_vm0, %v108_v25  ;;  %v125_v21 = vld [vmem:[%s3165_s1 + $0x98] sm:$0xff]  ;;  %v76_v55 = vld [vmem:[%s3164_s0 + $0x90] sm:$0xff]  ;;  %v83_v63 = vld [vmem:[%s3164_s0 + $0xc8] sm:$0xff] }
  0x43   :  { %2054 = vmatprep.subr.bf16.mxu0 %v2053_v26  ;;  %2157 = vmatpush3.bf16.msra.mxu1 %v2528_v4  ;;  %v129_v25 = vld [vmem:[%s3165_s1 + $0xb8] sm:$0xff]  ;;  %v80_v59 = vld [vmem:[%s3164_s0 + $0xb0] sm:$0xff]  ;;  %v86_v2 = vld [vmem:[%s3164_s0 + $0xe0] sm:$0xff] }
  0x44   :  { %2150 = vmatprep.subr.bf16.mxu1 %v2540_v10  ;;  %v87_v3 = vld [vmem:[%s3164_s0 + $0xe8] sm:$0xff]  ;;  %v89_v6 = vld [vmem:[%s3164_s0 + $0xf8] sm:$0xff]  ;;  %v2738_v7 = vld [vmem:[%s3168_s4] ss:$0 sm:$0xff] }
  0x45   :  { %1741 = vmatmul.mubr.msk.f32.gmra.mrb[2].mxu0 %vm150_vm0, %v109_v29  ;;  %v133_v29 = vld [vmem:[%s3165_s1 + $0xd8] sm:$0xff] }
  0x46   :  { %1743 = vmatprep.mubr.msk.f32.mxu0 %vm150_vm0, %v110_v30  ;;  %2056 = vmatpush3.bf16.msra.mxu0 %v2053_v26  ;;  %v130_v26 = vld [vmem:[%s3165_s1 + $0xc0] sm:$0xff] }
  0x47   :  { %2058 = vmatprep.subr.bf16.mxu0 %v2057_v31  ;;  %2158 = vmatpush3.bf16.msra.mxu1 %v2540_v10  ;;  %v134_v30 = vld [vmem:[%s3165_s1 + $0xe0] sm:$0xff] }
  0x48   :  { %2151 = vmatprep.subr.bf16.mxu1 %v2552_v15 }
  0x49   :  { %1744 = vmatmul.mubr.msk.f32.gmra.mrb[4].mxu0 %vm150_vm0, %v111_v36  ;;  %v60_v36 = vld [vmem:[%s3164_s0 + $0x10] sm:$0xff] }
  0x4a   :  { %1746 = vmatprep.mubr.msk.f32.mxu0 %vm150_vm0, %v112_v40  ;;  %2060 = vmatpush3.bf16.msra.mxu0 %v2057_v31  ;;  %v135_v31 = vld [vmem:[%s3165_s1 + $0xe8] sm:$0xff] }
  0x4b   :  { %2062 = vmatprep.subr.bf16.mxu0 %v2061_v41  ;;  %2159 = vmatpush3.bf16.msra.mxu1 %v2552_v15  ;;  %v63_v40 = vld [vmem:[%s3164_s0 + $0x28] sm:$0xff] }
  0x4c   :  { %2152 = vmatprep.subr.bf16.mxu1 %v2564_v20 }
  0x4d   :  { %1747 = vmatmul.mubr.msk.f32.gmra.mrb[6].mxu0 %vm150_vm0, %v113_v45  ;;  %v67_v45 = vld [vmem:[%s3164_s0 + $0x48] sm:$0xff] }
  0x4e   :  { %1749 = vmatprep.mubr.msk.f32.mxu0 %vm150_vm0, %v114_v48  ;;  %2064 = vmatpush3.bf16.msra.mxu0 %v2061_v41  ;;  %v64_v41 = vld [vmem:[%s3164_s0 + $0x30] sm:$0xff]  ;;  %v70_v48 = vld [vmem:[%s3164_s0 + $0x60] sm:$0xff] }
  0x4f   :  { %2066 = vmatprep.subr.bf16.mxu0 %v2065_v49  ;;  %2160 = vmatpush3.bf16.msra.mxu1 %v2564_v20 }
  0x50   :  { %2114 = vmatprep.subr.bf16.mxu1 %v2461_v37 }
  0x51   :  { %1750 = vmatmul.mubr.msk.f32.gmra.mrb[8].mxu0 %vm150_vm0, %v115_v53  ;;  %v74_v53 = vld [vmem:[%s3164_s0 + $0x80] sm:$0xff] }
  0x52   :  { %1752 = vmatprep.mubr.msk.f32.mxu0 %vm150_vm0, %v116_v56  ;;  %2068 = vmatpush3.bf16.msra.mxu0 %v2065_v49  ;;  %v71_v49 = vld [vmem:[%s3164_s0 + $0x68] sm:$0xff]  ;;  %v77_v56 = vld [vmem:[%s3164_s0 + $0x98] sm:$0xff] }
  0x53   :  { %2070 = vmatprep.subr.bf16.mxu0 %v2069_v57 }
  0x55   :  { %1753 = vmatmul.mubr.msk.f32.gmra.mrb[10].mxu0 %vm150_vm0, %v117_v61  ;;  %v81_v61 = vld [vmem:[%s3164_s0 + $0xb8] sm:$0xff] }
  0x56   :  { %1755 = vmatprep.mubr.msk.f32.mxu0 %vm150_vm0, %v118_v0  ;;  %2072 = vmatpush3.bf16.msra.mxu0 %v2069_v57  ;;  %v78_v57 = vld [vmem:[%s3164_s0 + $0xa0] sm:$0xff]  ;;  %v84_v0 = vld [vmem:[%s3164_s0 + $0xd0] sm:$0xff] }
  0x57   :  { %2074 = vmatprep.subr.bf16.mxu0 %v2073_v1 }
  0x59   :  { %1756 = vmatmul.mubr.msk.f32.gmra.mrb[12].mxu0 %vm150_vm0, %v119_v5  ;;  %v88_v5 = vld [vmem:[%s3164_s0 + $0xf0] sm:$0xff] }
  0x5a   :  { %1758 = vmatprep.mubr.msk.f32.mxu0 %vm150_vm0, %v120_v8  ;;  %2076 = vmatpush3.bf16.msra.mxu0 %v2073_v1  ;;  %v85_v1 = vld [vmem:[%s3164_s0 + $0xd8] sm:$0xff] }
  0x5b   :  { %2078 = vmatprep.subr.bf16.mxu0 %v2077_v9 }
  0x5d   :  { %1759 = vmatmul.mubr.msk.f32.gmra.mrb[14].mxu0 %vm150_vm0, %v121_v11 }
  0x5e   :  { %1761 = vmatprep.mubr.msk.f32.mxu0 %vm150_vm0, %v122_v14  ;;  %2080 = vmatpush3.bf16.msra.mxu0 %v2077_v9 }
  0x5f   :  { %2082 = vmatprep.subr.bf16.mxu0 %v2461_v37 }
  0x61   :  { %1762 = vmatmul.mubr.msk.f32.gmra.mrb[16].mxu0 %vm150_vm0, %v123_v18 }
  0x62   :  { %1764 = vmatprep.mubr.msk.f32.mxu0 %vm150_vm0, %v124_v19 }
  0x65   :  { %1765 = vmatmul.mubr.msk.f32.gmra.mrb[18].mxu0 %vm150_vm0, %v125_v21 }
  0x66   :  { %1767 = vmatprep.mubr.msk.f32.mxu0 %vm150_vm0, %v126_v22 }
  0x69   :  { %1768 = vmatmul.mubr.msk.f32.gmra.mrb[20].mxu0 %vm150_vm0, %v127_v23 }
  0x6a   :  { %1770 = vmatprep.mubr.msk.f32.mxu0 %vm150_vm0, %v128_v24 }
  0x6d   :  { %1771 = vmatmul.mubr.msk.f32.gmra.mrb[22].mxu0 %vm150_vm0, %v129_v25 }
  0x6e   :  { %1773 = vmatprep.mubr.msk.f32.mxu0 %vm150_vm0, %v130_v26 }
  0x71   :  { %1774 = vmatmul.mubr.msk.f32.gmra.mrb[24].mxu0 %vm150_vm0, %v131_v27 }
  0x72   :  { %1776 = vmatprep.mubr.msk.f32.mxu0 %vm150_vm0, %v132_v28 }
  0x75   :  { %1777 = vmatmul.mubr.msk.f32.gmra.mrb[26].mxu0 %vm150_vm0, %v133_v29 }
  0x76   :  { %1779 = vmatprep.mubr.msk.f32.mxu0 %vm150_vm0, %v134_v30 }
  0x79   :  { %1780 = vmatmul.mubr.msk.f32.gmra.mrb[28].mxu0 %vm150_vm0, %v135_v31 }
  0x7a   :  { %1782 = vmatprep.mubr.msk.f32.mxu0 %vm150_vm0, %v136_v32 }
  0x7d   :  { %1783 = vmatmul.mubr.msk.f32.gmra.mrb[30].mxu0 %vm150_vm0, %v137_v33 }
  0x7e   :  { %1817 = vmatprep.mubr.f32.mxu0 %v58_v34 }
  0x81   :  { %1818 = vmatmul.mubr.f32.vlgmr.msra.gmra.mrb[0].mxu0 %v59_v35 }
  0x82   :  { %1820 = vmatprep.mubr.f32.mxu0 %v60_v36  ;;  %2084 = vmatpush3.bf16.msra.mxu0 %v2461_v37 }
  0x83   :  { %2086 = vmatprep.subr.bf16.mxu0 %v2474_v44 }
  0x85   :  { %1821 = vmatmul.mubr.f32.gmra.mrb[2].mxu0 %v61_v38 }
  0x86   :  { %1823 = vmatprep.mubr.f32.mxu0 %v62_v39  ;;  %2088 = vmatpush3.bf16.msra.mxu0 %v2474_v44 }
  0x87   :  { %2090 = vmatprep.subr.bf16.mxu0 %v2492_v52 }
  0x89   :  { %1824 = vmatmul.mubr.f32.gmra.mrb[4].mxu0 %v63_v40 }
  0x8a   :  { %1826 = vmatprep.mubr.f32.mxu0 %v64_v41  ;;  %2092 = vmatpush3.bf16.msra.mxu0 %v2492_v52 }
  0x8b   :  { %2094 = vmatprep.subr.bf16.mxu0 %v2510_v60 }
  0x8d   :  { %1827 = vmatmul.mubr.f32.gmra.mrb[6].mxu0 %v65_v42 }
  0x8e   :  { %1829 = vmatprep.mubr.f32.mxu0 %v66_v43  ;;  %2096 = vmatpush3.bf16.msra.mxu0 %v2510_v60 }
  0x8f   :  { %2098 = vmatprep.subr.bf16.mxu0 %v2528_v4 }
  0x91   :  { %1830 = vmatmul.mubr.f32.gmra.mrb[8].mxu0 %v67_v45 }
  0x92   :  { %1832 = vmatprep.mubr.f32.mxu0 %v68_v46  ;;  %2100 = vmatpush3.bf16.msra.mxu0 %v2528_v4 }
  0x93   :  { %2102 = vmatprep.subr.bf16.mxu0 %v2540_v10 }
  0x95   :  { %1833 = vmatmul.mubr.f32.gmra.mrb[10].mxu0 %v69_v47 }
  0x96   :  { %1835 = vmatprep.mubr.f32.mxu0 %v70_v48  ;;  %2104 = vmatpush3.bf16.msra.mxu0 %v2540_v10 }
  0x97   :  { %2106 = vmatprep.subr.bf16.mxu0 %v2552_v15 }
  0x99   :  { %1836 = vmatmul.mubr.f32.gmra.mrb[12].mxu0 %v71_v49 }
  0x9a   :  { %1838 = vmatprep.mubr.f32.mxu0 %v72_v50  ;;  %2108 = vmatpush3.bf16.msra.mxu0 %v2552_v15 }
  0x9b   :  { %2110 = vmatprep.subr.bf16.mxu0 %v2564_v20 }
  0x9d   :  { %1839 = vmatmul.mubr.f32.gmra.mrb[14].mxu0 %v73_v51 }
  0x9e   :  { %1841 = vmatprep.mubr.f32.mxu0 %v74_v53  ;;  %2112 = vmatpush3.bf16.msra.mxu0 %v2564_v20 }
  0xa1   :  { %1842 = vmatmul.mubr.f32.gmra.mrb[16].mxu0 %v75_v54 }
  0xa2   :  { %1844 = vmatprep.mubr.f32.mxu0 %v76_v55 }
  0xa5   :  { %1845 = vmatmul.mubr.f32.gmra.mrb[18].mxu0 %v77_v56 }
  0xa6   :  { %1847 = vmatprep.mubr.f32.mxu0 %v78_v57 }
  0xa9   :  { %1848 = vmatmul.mubr.f32.gmra.mrb[20].mxu0 %v79_v58 }
  0xaa   :  { %1850 = vmatprep.mubr.f32.mxu0 %v80_v59 }
  0xad   :  { %1851 = vmatmul.mubr.f32.gmra.mrb[22].mxu0 %v81_v61 }
  0xae   :  { %1853 = vmatprep.mubr.f32.mxu0 %v82_v62 }
  0xb1   :  { %1854 = vmatmul.mubr.f32.gmra.mrb[24].mxu0 %v83_v63 }
  0xb2   :  { %1856 = vmatprep.mubr.f32.mxu0 %v84_v0 }
  0xb5   :  { %1857 = vmatmul.mubr.f32.gmra.mrb[26].mxu0 %v85_v1 }
  0xb6   :  { %1859 = vmatprep.mubr.f32.mxu0 %v86_v2 }
  0xb9   :  { %1860 = vmatmul.mubr.f32.gmra.mrb[28].mxu0 %v87_v3 }
  0xba   :  { %1862 = vmatprep.mubr.f32.mxu0 %v88_v5 }
  0xbd   :  { %1863 = vmatmul.mubr.f32.gmra.mrb[30].mxu0 %v89_v6 }
 0x154   :  { %v1819_v8 = vpop.f32.mrb[0].mxu0 }
 0x155   :  { %v538_v9 = vpop.f32.mrb[1].mxu0  ;;  %v2744_v12 = vadd.f32 %v1819_v8, %v2738_v7 }
 0x156   :  { %v2741_v11 = vadd.f32 %v2738_v7, %v538_v9 }
 0x158   :  { %v1822_v13 = vpop.f32.mrb[2].mxu0  ;;  %1897 = vmatprep.mubr.f32.mxu0 %v2741_v11 }
 0x159   :  { %v548_v14 = vpop.f32.mrb[3].mxu0  ;;  %1898 = vmatmul.mubr.f32.vlgmr.msra.gmra.mrb[32].mxu0 %v2744_v12  ;;  %v2752_v17 = vadd.f32 %v1822_v13, %v2738_v7 }
 0x15a   :  { %v2749_v16 = vadd.f32 %v2738_v7, %v548_v14 }
 0x15c   :  { %v1825_v18 = vpop.f32.mrb[4].mxu0  ;;  %1900 = vmatprep.mubr.f32.mxu1 %v2749_v16 }
 0x15d   :  { %v558_v19 = vpop.f32.mrb[5].mxu0  ;;  %1901 = vmatmul.mubr.f32.vlgmr.msra.gmra.mrb[0].mxu1 %v2752_v17  ;;  %v2761_v22 = vadd.f32 %v1825_v18, %v2738_v7 }
 0x15e   :  { %v2757_v21 = vadd.f32 %v2738_v7, %v558_v19  ;;  %2116 = vmatpush3.bf16.msra.mxu1 %v2461_v37 }
 0x15f   :  { %2118 = vmatprep.subr.bf16.mxu1 %v2474_v44 }
 0x160   :  { %v1828_v23 = vpop.f32.mrb[6].mxu0  ;;  %1903 = vmatprep.mubr.f32.mxu1 %v2757_v21 }
 0x161   :  { %v568_v24 = vpop.f32.mrb[7].mxu0  ;;  %1904 = vmatmul.mubr.f32.gmra.mrb[2].mxu1 %v2761_v22  ;;  %v2771_v26 = vadd.f32 %v1828_v23, %v2738_v7 }
 0x162   :  { %v2767_v25 = vadd.f32 %v2738_v7, %v568_v24  ;;  %2120 = vmatpush3.bf16.msra.mxu1 %v2474_v44 }
 0x163   :  { %2122 = vmatprep.subr.bf16.mxu1 %v2492_v52 }
 0x164   :  { %v1831_v37 = vpop.f32.mrb[8].mxu0  ;;  %1906 = vmatprep.mubr.f32.mxu1 %v2767_v25 }
 0x165   :  { %v578_v27 = vpop.f32.mrb[9].mxu0  ;;  %1907 = vmatmul.mubr.f32.gmra.mrb[4].mxu1 %v2771_v26  ;;  %v2781_v29 = vadd.f32 %v1831_v37, %v2738_v7 }
 0x166   :  { %v2777_v28 = vadd.f32 %v2738_v7, %v578_v27  ;;  %2124 = vmatpush3.bf16.msra.mxu1 %v2492_v52 }
 0x167   :  { %2126 = vmatprep.subr.bf16.mxu1 %v2510_v60 }
 0x168   :  { %v1834_v44 = vpop.f32.mrb[10].mxu0  ;;  %1909 = vmatprep.mubr.f32.mxu1 %v2777_v28 }
 0x169   :  { %v588_v30 = vpop.f32.mrb[11].mxu0  ;;  %1910 = vmatmul.mubr.f32.gmra.mrb[6].mxu1 %v2781_v29  ;;  %v2791_v32 = vadd.f32 %v1834_v44, %v2738_v7 }
 0x16a   :  { %v2787_v31 = vadd.f32 %v2738_v7, %v588_v30  ;;  %2128 = vmatpush3.bf16.msra.mxu1 %v2510_v60 }
 0x16b   :  { %2130 = vmatprep.subr.bf16.mxu1 %v2528_v4 }
 0x16c   :  { %v1837_v52 = vpop.f32.mrb[12].mxu0  ;;  %1912 = vmatprep.mubr.f32.mxu1 %v2787_v31 }
 0x16d   :  { %v598_v33 = vpop.f32.mrb[13].mxu0  ;;  %1913 = vmatmul.mubr.f32.gmra.mrb[8].mxu1 %v2791_v32  ;;  %v2801_v35 = vadd.f32 %v1837_v52, %v2738_v7 }
 0x16e   :  { %v2797_v34 = vadd.f32 %v2738_v7, %v598_v33  ;;  %2132 = vmatpush3.bf16.msra.mxu1 %v2528_v4 }
 0x16f   :  { %2134 = vmatprep.subr.bf16.mxu1 %v2540_v10 }
 0x170   :  { %v1840_v60 = vpop.f32.mrb[14].mxu0  ;;  %1915 = vmatprep.mubr.f32.mxu1 %v2797_v34 }
 0x171   :  { %v608_v36 = vpop.f32.mrb[15].mxu0  ;;  %1916 = vmatmul.mubr.f32.gmra.mrb[10].mxu1 %v2801_v35  ;;  %v2811_v39 = vadd.f32 %v1840_v60, %v2738_v7 }
 0x172   :  { %v2807_v38 = vadd.f32 %v2738_v7, %v608_v36  ;;  %2136 = vmatpush3.bf16.msra.mxu1 %v2540_v10 }
 0x173   :  { %2138 = vmatprep.subr.bf16.mxu1 %v2552_v15 }
 0x174   :  { %v1843_v4 = vpop.f32.mrb[16].mxu0  ;;  %1918 = vmatprep.mubr.f32.mxu1 %v2807_v38 }
 0x175   :  { %v618_v40 = vpop.f32.mrb[17].mxu0  ;;  %1919 = vmatmul.mubr.f32.gmra.mrb[12].mxu1 %v2811_v39  ;;  %v2821_v42 = vadd.f32 %v1843_v4, %v2738_v7 }
 0x176   :  { %v2817_v41 = vadd.f32 %v2738_v7, %v618_v40  ;;  %2140 = vmatpush3.bf16.msra.mxu1 %v2552_v15 }
 0x177   :  { %2142 = vmatprep.subr.bf16.mxu1 %v2564_v20 }
 0x178   :  { %v1846_v10 = vpop.f32.mrb[18].mxu0  ;;  %1921 = vmatprep.mubr.f32.mxu1 %v2817_v41 }
 0x179   :  { %v628_v43 = vpop.f32.mrb[19].mxu0  ;;  %1922 = vmatmul.mubr.f32.gmra.mrb[14].mxu1 %v2821_v42  ;;  %v2831_v46 = vadd.f32 %v1846_v10, %v2738_v7 }
 0x17a   :  { %v2827_v45 = vadd.f32 %v2738_v7, %v628_v43  ;;  %2144 = vmatpush3.bf16.msra.mxu1 %v2564_v20 }
 0x17c   :  { %v1849_v15 = vpop.f32.mrb[20].mxu0  ;;  %1924 = vmatprep.mubr.f32.mxu1 %v2827_v45 }
 0x17d   :  { %v638_v47 = vpop.f32.mrb[21].mxu0  ;;  %1925 = vmatmul.mubr.f32.gmra.mrb[16].mxu1 %v2831_v46  ;;  %v2839_v49 = vadd.f32 %v1849_v15, %v2738_v7 }
 0x17e   :  { %v2836_v48 = vadd.f32 %v2738_v7, %v638_v47 }
 0x180   :  { %v1852_v50 = vpop.f32.mrb[22].mxu0  ;;  %1927 = vmatprep.mubr.f32.mxu1 %v2836_v48 }
 0x181   :  { %v648_v51 = vpop.f32.mrb[23].mxu0  ;;  %1928 = vmatmul.mubr.f32.gmra.mrb[18].mxu1 %v2839_v49  ;;  %v2847_v53 = vadd.f32 %v1852_v50, %v2738_v7 }
 0x182   :  { %v2844_v20 = vadd.f32 %v2738_v7, %v648_v51 }
 0x184   :  { %v1855_v54 = vpop.f32.mrb[24].mxu0  ;;  %1930 = vmatprep.mubr.f32.mxu1 %v2844_v20 }
 0x185   :  { %v658_v55 = vpop.f32.mrb[25].mxu0  ;;  %1931 = vmatmul.mubr.f32.gmra.mrb[20].mxu1 %v2847_v53  ;;  %v2855_v57 = vadd.f32 %v1855_v54, %v2738_v7 }
 0x186   :  { %v2852_v56 = vadd.f32 %v2738_v7, %v658_v55 }
 0x188   :  { %v1858_v58 = vpop.f32.mrb[26].mxu0  ;;  %1933 = vmatprep.mubr.f32.mxu1 %v2852_v56 }
 0x189   :  { %v668_v59 = vpop.f32.mrb[27].mxu0  ;;  %1934 = vmatmul.mubr.f32.gmra.mrb[22].mxu1 %v2855_v57  ;;  %v2863_v62 = vadd.f32 %v1858_v58, %v2738_v7 }
 0x18a   :  { %v2860_v61 = vadd.f32 %v2738_v7, %v668_v59 }
 0x18c   :  { %v1861_v63 = vpop.f32.mrb[28].mxu0  ;;  %1936 = vmatprep.mubr.f32.mxu1 %v2860_v61 }
 0x18d   :  { %v678_v0 = vpop.f32.mrb[29].mxu0  ;;  %1937 = vmatmul.mubr.f32.gmra.mrb[24].mxu1 %v2863_v62  ;;  %v2871_v2 = vadd.f32 %v1861_v63, %v2738_v7 }
 0x18e   :  { %v2868_v1 = vadd.f32 %v2738_v7, %v678_v0 }
 0x190   :  { %v1864_v3 = vpop.f32.mrb[30].mxu0  ;;  %1939 = vmatprep.mubr.f32.mxu1 %v2868_v1 }
 0x191   :  { %v688_v5 = vpop.f32.mrb[31].mxu0  ;;  %1940 = vmatmul.mubr.f32.gmra.mrb[26].mxu1 %v2871_v2  ;;  %v2879_v8 = vadd.f32 %v1864_v3, %v2738_v7 }
 0x192   :  { %v2876_v6 = vadd.f32 %v2738_v7, %v688_v5 }
 0x194   :  { %1942 = vmatprep.mubr.f32.mxu1 %v2876_v6 }
 0x195   :  { %1943 = vmatmul.mubr.f32.gmra.mrb[28].mxu1 %v2879_v8 }
 0x22c   :  { %v1899_v9 = vpop.f32.mrb[32].mxu0 }
 0x22d   :  { %v2884_v13 = vsub.f32 %v2744_v12, %v1899_v9  ;;  %v818_v14 = vpop.f32.mrb[33].mxu0 }
 0x22e   :  { %v2887_v18 = vsub.f32 %v2741_v11, %v818_v14 }
 0x22f   :  { %v1010_v7 = vmul.f32 %v2884_v13, %v2884_v13 }
 0x230   :  { %v1009_v19 = vmul.f32 %v2887_v18, %v2887_v18  ;;  %v1902_v23 = vpop.f32.mrb[0].mxu1 }
 0x231   :  { %v2894_v24 = vsub.f32 %v2752_v17, %v1902_v23  ;;  %v828_v37 = vpop.f32.mrb[1].mxu1 }
 0x232   :  { %v2897_v27 = vsub.f32 %v2749_v16, %v828_v37  ;;  %1977 = vmatprep.mubr.f32.mxu1 %v1009_v19 }
 0x233   :  { %1978 = vmatmul.mubr.f32.vlgmr.msra.gmra.mrb[30].mxu1 %v1010_v7  ;;  %v1012_v44 = vmul.f32 %v2894_v24, %v2894_v24 }
 0x234   :  { %v1011_v11 = vmul.f32 %v2897_v27, %v2897_v27  ;;  %v1905_v12 = vpop.f32.mrb[2].mxu1 }
 0x235   :  { %v2904_v30 = vsub.f32 %v2761_v22, %v1905_v12  ;;  %v838_v52 = vpop.f32.mrb[3].mxu1 }
 0x236   :  { %v2907_v17 = vsub.f32 %v2757_v21, %v838_v52  ;;  %1980 = vmatprep.mubr.f32.mxu1 %v1011_v11 }
 0x237   :  { %1981 = vmatmul.mubr.f32.gmra.mrb[32].mxu1 %v1012_v44  ;;  %v1014_v60 = vmul.f32 %v2904_v30, %v2904_v30 }
 0x238   :  { %v1013_v16 = vmul.f32 %v2907_v17, %v2907_v17  ;;  %v1908_v33 = vpop.f32.mrb[4].mxu1 }
 0x239   :  { %v2914_v36 = vsub.f32 %v2771_v26, %v1908_v33  ;;  %v848_v4 = vpop.f32.mrb[5].mxu1 }
 0x23a   :  { %v2917_v22 = vsub.f32 %v2767_v25, %v848_v4  ;;  %1983 = vmatprep.mubr.f32.mxu1 %v1013_v16 }
 0x23b   :  { %1984 = vmatmul.mubr.f32.gmra.mrb[34].mxu1 %v1014_v60  ;;  %v1016_v10 = vmul.f32 %v2914_v36, %v2914_v36 }
 0x23c   :  { %v1015_v21 = vmul.f32 %v2917_v22, %v2917_v22  ;;  %v1911_v40 = vpop.f32.mrb[6].mxu1 }
 0x23d   :  { %v2924_v43 = vsub.f32 %v2781_v29, %v1911_v40  ;;  %v858_v15 = vpop.f32.mrb[7].mxu1 }
 0x23e   :  { %v2927_v26 = vsub.f32 %v2777_v28, %v858_v15  ;;  %1986 = vmatprep.mubr.f32.mxu1 %v1015_v21 }
 0x23f   :  { %1987 = vmatmul.mubr.f32.gmra.mrb[36].mxu1 %v1016_v10  ;;  %v1018_v50 = vmul.f32 %v2924_v43, %v2924_v43 }
 0x240   :  { %v1017_v25 = vmul.f32 %v2927_v26, %v2927_v26  ;;  %v1914_v47 = vpop.f32.mrb[8].mxu1 }
 0x241   :  { %v2934_v51 = vsub.f32 %v2791_v32, %v1914_v47  ;;  %v868_v54 = vpop.f32.mrb[9].mxu1 }
 0x242   :  { %v2937_v29 = vsub.f32 %v2787_v31, %v868_v54  ;;  %1989 = vmatprep.mubr.f32.mxu1 %v1017_v25 }
 0x243   :  { %1990 = vmatmul.mubr.f32.gmra.mrb[38].mxu1 %v1018_v50  ;;  %v1020_v58 = vmul.f32 %v2934_v51, %v2934_v51 }
 0x244   :  { %v1019_v28 = vmul.f32 %v2937_v29, %v2937_v29  ;;  %v1917_v55 = vpop.f32.mrb[10].mxu1 }
 0x245   :  { %v2944_v59 = vsub.f32 %v2801_v35, %v1917_v55  ;;  %v878_v63 = vpop.f32.mrb[11].mxu1 }
 0x246   :  { %v2947_v32 = vsub.f32 %v2797_v34, %v878_v63  ;;  %1992 = vmatprep.mubr.f32.mxu1 %v1019_v28 }
 0x247   :  { %1993 = vmatmul.mubr.f32.gmra.mrb[40].mxu1 %v1020_v58  ;;  %v1022_v3 = vmul.f32 %v2944_v59, %v2944_v59 }
 0x248   :  { %v1021_v31 = vmul.f32 %v2947_v32, %v2947_v32  ;;  %v1920_v0 = vpop.f32.mrb[12].mxu1 }
 0x249   :  { %v2954_v5 = vsub.f32 %v2811_v39, %v1920_v0  ;;  %v888_v9 = vpop.f32.mrb[13].mxu1 }
 0x24a   :  { %v2957_v35 = vsub.f32 %v2807_v38, %v888_v9  ;;  %1995 = vmatprep.mubr.f32.mxu1 %v1021_v31 }
 0x24b   :  { %1996 = vmatmul.mubr.f32.gmra.mrb[42].mxu1 %v1022_v3  ;;  %v1024_v19 = vmul.f32 %v2954_v5, %v2954_v5 }
 0x24c   :  { %v1023_v34 = vmul.f32 %v2957_v35, %v2957_v35  ;;  %v1923_v14 = vpop.f32.mrb[14].mxu1 }
 0x24d   :  { %v2964_v23 = vsub.f32 %v2821_v42, %v1923_v14  ;;  %v898_v7 = vpop.f32.mrb[15].mxu1 }
 0x24e   :  { %v2967_v39 = vsub.f32 %v2817_v41, %v898_v7  ;;  %1998 = vmatprep.mubr.f32.mxu1 %v1023_v34 }
 0x24f   :  { %1999 = vmatmul.mubr.f32.gmra.mrb[44].mxu1 %v1024_v19  ;;  %v1026_v11 = vmul.f32 %v2964_v23, %v2964_v23 }
 0x250   :  { %v1025_v38 = vmul.f32 %v2967_v39, %v2967_v39  ;;  %v1926_v37 = vpop.f32.mrb[16].mxu1 }
 0x251   :  { %v2974_v12 = vsub.f32 %v2831_v46, %v1926_v37  ;;  %v908_v44 = vpop.f32.mrb[17].mxu1 }
 0x252   :  { %v2977_v42 = vsub.f32 %v2827_v45, %v908_v44  ;;  %2001 = vmatprep.mubr.f32.mxu1 %v1025_v38 }
 0x253   :  { %2002 = vmatmul.mubr.f32.gmra.mrb[46].mxu1 %v1026_v11  ;;  %v1028_v16 = vmul.f32 %v2974_v12, %v2974_v12 }
 0x254   :  { %v1027_v41 = vmul.f32 %v2977_v42, %v2977_v42  ;;  %v1929_v52 = vpop.f32.mrb[18].mxu1 }
 0x255   :  { %v2984_v33 = vsub.f32 %v2839_v49, %v1929_v52  ;;  %v918_v60 = vpop.f32.mrb[19].mxu1 }
 0x256   :  { %v2987_v46 = vsub.f32 %v2836_v48, %v918_v60  ;;  %2004 = vmatprep.mubr.f32.mxu1 %v1027_v41 }
 0x257   :  { %2005 = vmatmul.mubr.f32.gmra.mrb[48].mxu1 %v1028_v16  ;;  %v1030_v21 = vmul.f32 %v2984_v33, %v2984_v33 }
 0x258   :  { %v1029_v45 = vmul.f32 %v2987_v46, %v2987_v46  ;;  %v1932_v4 = vpop.f32.mrb[20].mxu1 }
 0x259   :  { %v2994_v40 = vsub.f32 %v2847_v53, %v1932_v4  ;;  %v928_v10 = vpop.f32.mrb[21].mxu1 }
 0x25a   :  { %v2997_v49 = vsub.f32 %v2844_v20, %v928_v10  ;;  %2007 = vmatprep.mubr.f32.mxu1 %v1029_v45 }
 0x25b   :  { %2008 = vmatmul.mubr.f32.gmra.mrb[50].mxu1 %v1030_v21  ;;  %v1032_v25 = vmul.f32 %v2994_v40, %v2994_v40 }
 0x25c   :  { %v1031_v48 = vmul.f32 %v2997_v49, %v2997_v49  ;;  %v1935_v15 = vpop.f32.mrb[22].mxu1 }
 0x25d   :  { %v3004_v47 = vsub.f32 %v2855_v57, %v1935_v15  ;;  %v938_v50 = vpop.f32.mrb[23].mxu1 }
 0x25e   :  { %v3007_v53 = vsub.f32 %v2852_v56, %v938_v50  ;;  %2010 = vmatprep.mubr.f32.mxu1 %v1031_v48  ;;  %v3046_v48 = vld [vmem:[%s3170_s6] ss:$0 sm:$0xff]  ;;  %s2338_s6 = smov [#allocation7]  }
 0x25f   :  { %2011 = vmatmul.mubr.f32.gmra.mrb[52].mxu1 %v1032_v25  ;;  %v1034_v28 = vmul.f32 %v3004_v47, %v3004_v47 }
 0x260   :  { %v1033_v20 = vmul.f32 %v3007_v53, %v3007_v53  ;;  %v1938_v54 = vpop.f32.mrb[24].mxu1 }
 0x261   :  { %v3014_v55 = vsub.f32 %v2863_v62, %v1938_v54  ;;  %v948_v58 = vpop.f32.mrb[25].mxu1 }
 0x262   :  { %v3017_v57 = vsub.f32 %v2860_v61, %v948_v58  ;;  %2013 = vmatprep.mubr.f32.mxu1 %v1033_v20 }
 0x263   :  { %2014 = vmatmul.mubr.f32.gmra.mrb[54].mxu1 %v1034_v28  ;;  %v1036_v31 = vmul.f32 %v3014_v55, %v3014_v55  ;;  %v3052_v28 = vld [vmem:[%s3171_s7] ss:$0 sm:$0xff]  ;;  %s1477_s7 = sshll.u32 %s2338_s6, 4  ;;  %s1478_s7 = int_to_ptr.vmem [resolvable:$true] %s1477_s7 }
 0x264   :  { %v1035_v56 = vmul.f32 %v3017_v57, %v3017_v57  ;;  %v1941_v63 = vpop.f32.mrb[26].mxu1  ;;  %s2306_s5 = scalar_lea.vmem %s1478_s7, 4096  ;;  %p2311_p3 = scmp.lt.s32.totalorder %s1478_s7, %s1478_s7 }
 0x265   :  { %v3024_v0 = vsub.f32 %v2871_v2, %v1941_v63  ;;  %v958_v3 = vpop.f32.mrb[27].mxu1  ;;  %p2307_p2 = scmp.ne.s32.totalorder %s1478_s7, %s2306_s5  ;;  %p2312_p4 = scmp.lt.s32.totalorder %s2306_s5, %s2306_s5 }
 0x266   :  { %v3027_v62 = vsub.f32 %v2868_v1, %v958_v3  ;;  %2016 = vmatprep.mubr.f32.mxu1 %v1035_v56 }
 0x267   :  { %2017 = vmatmul.mubr.f32.gmra.mrb[56].mxu1 %v1036_v31  ;;  %v1038_v34 = vmul.f32 %v3024_v0, %v3024_v0  ;;  %p2313_p5 = por %p2312_p4, %p2311_p3 }
 0x268   :  { %v1037_v61 = vmul.f32 %v3027_v62, %v3027_v62  ;;  %v1944_v9 = vpop.f32.mrb[28].mxu1 }
 0x269   :  { %v3034_v14 = vsub.f32 %v2879_v8, %v1944_v9  ;;  %v968_v19 = vpop.f32.mrb[29].mxu1  ;;  %p2314_p6 = pnand %p2313_p5, %p2307_p2 }
 0x26a   :  { %v3037_v2 = vsub.f32 %v2876_v6, %v968_v19  ;;  %2019 = vmatprep.mubr.f32.mxu1 %v1037_v61 }
 0x26b   :  { %2020 = vmatmul.mubr.f32.gmra.mrb[58].mxu1 %v1038_v34  ;;  %v1040_v7 = vmul.f32 %v3034_v14, %v3034_v14 }
 0x26c   :  { %v1039_v1 = vmul.f32 %v3037_v2, %v3037_v2 }
 0x26e   :  { %2022 = vmatprep.mubr.f32.mxu1 %v1039_v1 }
 0x26f   :  { %2023 = vmatmul.mubr.f32.gmra.mrb[60].mxu1 %v1040_v7 }
 0x306   :  { %v1979_v38 = vpop.f32.mrb[30].mxu1 }
 0x307   :  { %v1113_v37 = vadd.f32 1e-05, %v1979_v38  ;;  %v1107_v11 = vpop.f32.mrb[31].mxu1 }
 0x308   :  { %v1108_v44 = vadd.f32 1e-05, %v1107_v11 }
 0x309   :  { %2198 = vrsqrt.f32 %v1113_v37 }
 0x30a   :  { %2200 = vrsqrt.f32 %v1108_v44  ;;  %v1982_v8 = vpop.f32.mrb[32].mxu1 }
 0x30b   :  { %v1123_v41 = vadd.f32 1e-05, %v1982_v8  ;;  %v1117_v6 = vpop.f32.mrb[33].mxu1 }
 0x30c   :  { %v1118_v52 = vadd.f32 1e-05, %v1117_v6 }
 0x30d   :  { %2202 = vrsqrt.f32 %v1123_v41 }
 0x30e   :  { %2204 = vrsqrt.f32 %v1118_v52  ;;  %v1985_v16 = vpop.f32.mrb[34].mxu1 }
 0x30f   :  { %v1133_v60 = vadd.f32 1e-05, %v1985_v16  ;;  %v1127_v45 = vpop.f32.mrb[35].mxu1 }
 0x310   :  { %v1128_v4 = vadd.f32 1e-05, %v1127_v45 }
 0x311   :  { %2206 = vrsqrt.f32 %v1133_v60 }
 0x312   :  { %2208 = vrsqrt.f32 %v1128_v4  ;;  %v1988_v21 = vpop.f32.mrb[36].mxu1 }
 0x313   :  { %v2199_v10 = vpop.eup %2198  ;;  %v1143_v15 = vadd.f32 1e-05, %v1988_v21  ;;  %v1137_v25 = vpop.f32.mrb[37].mxu1 }
 0x314   :  { %v2201_v50 = vpop.eup %2200  ;;  %v1299_v20 = vmul.f32 %v2199_v10, %v2884_v13  ;;  %v1138_v54 = vadd.f32 1e-05, %v1137_v25 }
 0x315   :  { %v1298_v58 = vmul.f32 %v2201_v50, %v2887_v18  ;;  %2210 = vrsqrt.f32 %v1143_v15 }
 0x316   :  { %v1338_v56 = vmul.f32 %v3046_v48, %v1299_v20  ;;  %2212 = vrsqrt.f32 %v1138_v54  ;;  %v1991_v63 = vpop.f32.mrb[38].mxu1 }
 0x317   :  { %v2203_v31 = vpop.eup %2202  ;;  %v1337_v3 = vmul.f32 %v3046_v48, %v1298_v58  ;;  %v1153_v61 = vadd.f32 1e-05, %v1991_v63  ;;  %v1147_v9 = vpop.f32.mrb[39].mxu1 }
 0x318   :  { %v2205_v34 = vpop.eup %2204  ;;  %v1377_v13 = vadd.f32 %v3052_v28, %v1338_v56  ;;  %v1301_v19 = vmul.f32 %v2203_v31, %v2894_v24  ;;  %v1148_v1 = vadd.f32 1e-05, %v1147_v9 }
 0x319   :  { %v1376_v7 = vadd.f32 %v3052_v28, %v1337_v3  ;;  %v1300_v18 = vmul.f32 %v2205_v34, %v2897_v27  ;;  %2214 = vrsqrt.f32 %v1153_v61 }
 0x31a   :  { %v1409_v38 = vmax.f32 %v1377_v13, 0.0  ;;  %v1340_v37 = vmul.f32 %v3046_v48, %v1301_v19  ;;  %2216 = vrsqrt.f32 %v1148_v1  ;;  %v1994_v11 = vpop.f32.mrb[40].mxu1 }
 0x31b   :  { %v2207_v44 = vpop.eup %2206  ;;  %v1408_v8 = vmax.f32 %v1376_v7, 0.0  ;;  %v1339_v41 = vmul.f32 %v3046_v48, %v1300_v18  ;;  %v1163_v6 = vadd.f32 1e-05, %v1994_v11  ;;  %v1157_v52 = vpop.f32.mrb[41].mxu1 }
 0x31c   :  { %v2209_v16 = vpop.eup %2208  ;;  %1441 = vst [vmem:[#allocation7 + $0x8] sm:$0xff] %v1409_v38  ;;  %v1379_v24 = vadd.f32 %v3052_v28, %v1340_v37  ;;  %v1303_v60 = vmul.f32 %v2207_v44, %v2904_v30  ;;  %v1158_v45 = vadd.f32 1e-05, %v1157_v52 }
 0x31d   :  { %1440 = vst [vmem:[#allocation7] sm:$0xff] %v1408_v8  ;;  %v1378_v27 = vadd.f32 %v3052_v28, %v1339_v41  ;;  %v1302_v4 = vmul.f32 %v2209_v16, %v2907_v17  ;;  %2218 = vrsqrt.f32 %v1163_v6 }
 0x31e   :  { %v1411_v21 = vmax.f32 %v1379_v24, 0.0  ;;  %v1342_v10 = vmul.f32 %v3046_v48, %v1303_v60  ;;  %2220 = vrsqrt.f32 %v1158_v45  ;;  %v1997_v15 = vpop.f32.mrb[42].mxu1 }
 0x31f   :  { %v2211_v25 = vpop.eup %2210  ;;  %v1410_v50 = vmax.f32 %v1378_v27, 0.0  ;;  %v1341_v20 = vmul.f32 %v3046_v48, %v1302_v4  ;;  %v1173_v54 = vadd.f32 1e-05, %v1997_v15  ;;  %v1167_v58 = vpop.f32.mrb[43].mxu1 }
 0x320   :  { %v2213_v56 = vpop.eup %2212  ;;  %1443 = vst [vmem:[#allocation7 + $0x18] sm:$0xff] %v1411_v21  ;;  %v1381_v30 = vadd.f32 %v3052_v28, %v1342_v10  ;;  %v1305_v63 = vmul.f32 %v2211_v25, %v2914_v36  ;;  %v1168_v31 = vadd.f32 1e-05, %v1167_v58 }
 0x321   :  { %1442 = vst [vmem:[#allocation7 + $0x10] sm:$0xff] %v1410_v50  ;;  %v1380_v17 = vadd.f32 %v3052_v28, %v1341_v20  ;;  %v1304_v3 = vmul.f32 %v2213_v56, %v2917_v22  ;;  %2222 = vrsqrt.f32 %v1173_v54 }
 0x322   :  { %v1413_v61 = vmax.f32 %v1381_v30, 0.0  ;;  %v1344_v9 = vmul.f32 %v3046_v48, %v1305_v63  ;;  %2224 = vrsqrt.f32 %v1168_v31  ;;  %v2000_v34 = vpop.f32.mrb[44].mxu1 }
 0x323   :  { %v2215_v13 = vpop.eup %2214  ;;  %v1412_v19 = vmax.f32 %v1380_v17, 0.0  ;;  %v1343_v1 = vmul.f32 %v3046_v48, %v1304_v3  ;;  %v1183_v7 = vadd.f32 1e-05, %v2000_v34  ;;  %v1177_v18 = vpop.f32.mrb[45].mxu1 }
 0x324   :  { %v2217_v38 = vpop.eup %2216  ;;  %1445 = vst [vmem:[#allocation7 + $0x28] sm:$0xff] %v1413_v61  ;;  %v1383_v36 = vadd.f32 %v3052_v28, %v1344_v9  ;;  %v1307_v37 = vmul.f32 %v2215_v13, %v2924_v43  ;;  %v1178_v11 = vadd.f32 1e-05, %v1177_v18 }
 0x325   :  { %1444 = vst [vmem:[#allocation7 + $0x20] sm:$0xff] %v1412_v19  ;;  %v1382_v22 = vadd.f32 %v3052_v28, %v1343_v1  ;;  %v1306_v44 = vmul.f32 %v2217_v38, %v2927_v26  ;;  %2226 = vrsqrt.f32 %v1183_v7 }
 0x326   :  { %v1415_v8 = vmax.f32 %v1383_v36, 0.0  ;;  %v1346_v41 = vmul.f32 %v3046_v48, %v1307_v37  ;;  %2228 = vrsqrt.f32 %v1178_v11  ;;  %v2003_v6 = vpop.f32.mrb[46].mxu1 }
 0x327   :  { %v2219_v52 = vpop.eup %2218  ;;  %v1414_v16 = vmax.f32 %v1382_v22, 0.0  ;;  %v1345_v24 = vmul.f32 %v3046_v48, %v1306_v44  ;;  %v1193_v60 = vadd.f32 1e-05, %v2003_v6  ;;  %v1187_v45 = vpop.f32.mrb[47].mxu1 }
 0x328   :  { %v2221_v27 = vpop.eup %2220  ;;  %1447 = vst [vmem:[#allocation7 + $0x38] sm:$0xff] %v1415_v8  ;;  %v1385_v43 = vadd.f32 %v3052_v28, %v1346_v41  ;;  %v1309_v4 = vmul.f32 %v2219_v52, %v2934_v51  ;;  %v1188_v21 = vadd.f32 1e-05, %v1187_v45 }
 0x329   :  { %1446 = vst [vmem:[#allocation7 + $0x30] sm:$0xff] %v1414_v16  ;;  %v1384_v26 = vadd.f32 %v3052_v28, %v1345_v24  ;;  %v1308_v10 = vmul.f32 %v2221_v27, %v2937_v29  ;;  %2230 = vrsqrt.f32 %v1193_v60 }
 0x32a   :  { %v1417_v15 = vmax.f32 %v1385_v43, 0.0  ;;  %v1348_v25 = vmul.f32 %v3046_v48, %v1309_v4  ;;  %2232 = vrsqrt.f32 %v1188_v21  ;;  %v2006_v50 = vpop.f32.mrb[48].mxu1 }
 0x32b   :  { %v2223_v20 = vpop.eup %2222  ;;  %v1416_v54 = vmax.f32 %v1384_v26, 0.0  ;;  %v1347_v58 = vmul.f32 %v3046_v48, %v1308_v10  ;;  %v1203_v56 = vadd.f32 1e-05, %v2006_v50  ;;  %v1197_v30 = vpop.f32.mrb[49].mxu1 }
 0x32c   :  { %v2225_v63 = vpop.eup %2224  ;;  %1449 = vst [vmem:[#allocation7 + $0x48] sm:$0xff] %v1417_v15  ;;  %v1387_v51 = vadd.f32 %v3052_v28, %v1348_v25  ;;  %v1311_v31 = vmul.f32 %v2223_v20, %v2944_v59  ;;  %v1198_v17 = vadd.f32 1e-05, %v1197_v30 }
 0x32d   :  { %1448 = vst [vmem:[#allocation7 + $0x40] sm:$0xff] %v1416_v54  ;;  %v1386_v29 = vadd.f32 %v3052_v28, %v1347_v58  ;;  %v1310_v3 = vmul.f32 %v2225_v63, %v2947_v32  ;;  %2234 = vrsqrt.f32 %v1203_v56 }
 0x32e   :  { %v1419_v61 = vmax.f32 %v1387_v51, 0.0  ;;  %v1350_v9 = vmul.f32 %v3046_v48, %v1311_v31  ;;  %2236 = vrsqrt.f32 %v1198_v17  ;;  %v2009_v34 = vpop.f32.mrb[50].mxu1 }
 0x32f   :  { %v2227_v13 = vpop.eup %2226  ;;  %v1418_v19 = vmax.f32 %v1386_v29, 0.0  ;;  %v1349_v1 = vmul.f32 %v3046_v48, %v1310_v3  ;;  %v1213_v7 = vadd.f32 1e-05, %v2009_v34  ;;  %v1207_v18 = vpop.f32.mrb[51].mxu1 }
 0x330   :  { %v2229_v38 = vpop.eup %2228  ;;  %1451 = vst [vmem:[#allocation7 + $0x58] sm:$0xff] %v1419_v61  ;;  %v1389_v59 = vadd.f32 %v3052_v28, %v1350_v9  ;;  %v1313_v36 = vmul.f32 %v2227_v13, %v2954_v5  ;;  %v1208_v37 = vadd.f32 1e-05, %v1207_v18 }
 0x331   :  { %1450 = vst [vmem:[#allocation7 + $0x50] sm:$0xff] %v1418_v19  ;;  %v1388_v32 = vadd.f32 %v3052_v28, %v1349_v1  ;;  %v1312_v11 = vmul.f32 %v2229_v38, %v2957_v35  ;;  %2238 = vrsqrt.f32 %v1213_v7 }
 0x332   :  { %v1421_v22 = vmax.f32 %v1389_v59, 0.0  ;;  %v1352_v44 = vmul.f32 %v3046_v48, %v1313_v36  ;;  %2240 = vrsqrt.f32 %v1208_v37  ;;  %v2012_v8 = vpop.f32.mrb[52].mxu1 }
 0x333   :  { %v2231_v41 = vpop.eup %2230  ;;  %v1420_v6 = vmax.f32 %v1388_v32, 0.0  ;;  %v1351_v52 = vmul.f32 %v3046_v48, %v1312_v11  ;;  %v1223_v16 = vadd.f32 1e-05, %v2012_v8  ;;  %v1217_v24 = vpop.f32.mrb[53].mxu1 }
 0x334   :  { %v2233_v60 = vpop.eup %2232  ;;  %1453 = vst [vmem:[#allocation7 + $0x68] sm:$0xff] %v1421_v22  ;;  %v1391_v5 = vadd.f32 %v3052_v28, %v1352_v44  ;;  %v1315_v45 = vmul.f32 %v2231_v41, %v2964_v23  ;;  %v1218_v27 = vadd.f32 1e-05, %v1217_v24 }
 0x335   :  { %1452 = vst [vmem:[#allocation7 + $0x60] sm:$0xff] %v1420_v6  ;;  %v1390_v35 = vadd.f32 %v3052_v28, %v1351_v52  ;;  %v1314_v43 = vmul.f32 %v2233_v60, %v2967_v39  ;;  %2242 = vrsqrt.f32 %v1223_v16 }
 0x336   :  { %v1423_v4 = vmax.f32 %v1391_v5, 0.0  ;;  %v1354_v21 = vmul.f32 %v3046_v48, %v1315_v45  ;;  %2244 = vrsqrt.f32 %v1218_v27  ;;  %v2015_v26 = vpop.f32.mrb[54].mxu1 }
 0x337   :  { %v2235_v10 = vpop.eup %2234  ;;  %v1422_v15 = vmax.f32 %v1390_v35, 0.0  ;;  %v1353_v25 = vmul.f32 %v3046_v48, %v1314_v43  ;;  %v1233_v50 = vadd.f32 1e-05, %v2015_v26  ;;  %v1227_v20 = vpop.f32.mrb[55].mxu1 }
 0x338   :  { %v2237_v54 = vpop.eup %2236  ;;  %1455 = vst [vmem:[#allocation7 + $0x78] sm:$0xff] %v1423_v4  ;;  %v1393_v23 = vadd.f32 %v3052_v28, %v1354_v21  ;;  %v1317_v58 = vmul.f32 %v2235_v10, %v2974_v12  ;;  %v1228_v56 = vadd.f32 1e-05, %v1227_v20 }
 0x339   :  { %1454 = vst [vmem:[#allocation7 + $0x70] sm:$0xff] %v1422_v15  ;;  %v1392_v39 = vadd.f32 %v3052_v28, %v1353_v25  ;;  %v1316_v30 = vmul.f32 %v2237_v54, %v2977_v42  ;;  %2246 = vrsqrt.f32 %v1233_v50 }
 0x33a   :  { %v1425_v63 = vmax.f32 %v1393_v23, 0.0  ;;  %v1356_v51 = vmul.f32 %v3046_v48, %v1317_v58  ;;  %2248 = vrsqrt.f32 %v1228_v56  ;;  %v2018_v31 = vpop.f32.mrb[56].mxu1 }
 0x33b   :  { %v2239_v17 = vpop.eup %2238  ;;  %v1424_v29 = vmax.f32 %v1392_v39, 0.0  ;;  %v1355_v3 = vmul.f32 %v3046_v48, %v1316_v30  ;;  %v1243_v61 = vadd.f32 1e-05, %v2018_v31  ;;  %v1237_v9 = vpop.f32.mrb[57].mxu1 }
 0x33c   :  { %v2241_v34 = vpop.eup %2240  ;;  %1457 = vst [vmem:[#allocation7 + $0x88] sm:$0xff] %v1425_v63  ;;  %v1395_v12 = vadd.f32 %v3052_v28, %v1356_v51  ;;  %v1319_v13 = vmul.f32 %v2239_v17, %v2984_v33  ;;  %v1238_v19 = vadd.f32 1e-05, %v1237_v9 }
 0x33d   :  { %1456 = vst [vmem:[#allocation7 + $0x80] sm:$0xff] %v1424_v29  ;;  %v1394_v42 = vadd.f32 %v3052_v28, %v1355_v3  ;;  %v1318_v1 = vmul.f32 %v2241_v34, %v2987_v46  ;;  %2250 = vrsqrt.f32 %v1243_v61 }
 0x33e   :  { %v1427_v7 = vmax.f32 %v1395_v12, 0.0  ;;  %v1358_v18 = vmul.f32 %v3046_v48, %v1319_v13  ;;  %2252 = vrsqrt.f32 %v1238_v19  ;;  %v2021_v38 = vpop.f32.mrb[58].mxu1 }
 0x33f   :  { %v2243_v59 = vpop.eup %2242  ;;  %v1426_v36 = vmax.f32 %v1394_v42, 0.0  ;;  %v1357_v37 = vmul.f32 %v3046_v48, %v1318_v1  ;;  %v1253_v32 = vadd.f32 1e-05, %v2021_v38  ;;  %v1247_v11 = vpop.f32.mrb[59].mxu1 }
 0x340   :  { %v2245_v22 = vpop.eup %2244  ;;  %1459 = vst [vmem:[#allocation7 + $0x98] sm:$0xff] %v1427_v7  ;;  %v1397_v33 = vadd.f32 %v3052_v28, %v1358_v18  ;;  %v1321_v44 = vmul.f32 %v2243_v59, %v2994_v40  ;;  %v1248_v8 = vadd.f32 1e-05, %v1247_v11 }
 0x341   :  { %1458 = vst [vmem:[#allocation7 + $0x90] sm:$0xff] %v1426_v36  ;;  %v1396_v46 = vadd.f32 %v3052_v28, %v1357_v37  ;;  %v1320_v41 = vmul.f32 %v2245_v22, %v2997_v49  ;;  %2254 = vrsqrt.f32 %v1253_v32 }
 0x342   :  { %v1429_v6 = vmax.f32 %v1397_v33, 0.0  ;;  %v1360_v52 = vmul.f32 %v3046_v48, %v1321_v44  ;;  %2256 = vrsqrt.f32 %v1248_v8  ;;  %v2024_v16 = vpop.f32.mrb[60].mxu1 }
 0x343   :  { %v2247_v24 = vpop.eup %2246  ;;  %v1428_v60 = vmax.f32 %v1396_v46, 0.0  ;;  %v1359_v5 = vmul.f32 %v3046_v48, %v1320_v41  ;;  %v1263_v45 = vadd.f32 1e-05, %v2024_v16  ;;  %v1257_v27 = vpop.f32.mrb[61].mxu1 }
 0x344   :  { %v2249_v35 = vpop.eup %2248  ;;  %1461 = vst [vmem:[#allocation7 + $0xa8] sm:$0xff] %v1429_v6  ;;  %v1399_v40 = vadd.f32 %v3052_v28, %v1360_v52  ;;  %v1323_v43 = vmul.f32 %v2247_v24, %v3004_v47  ;;  %v1258_v4 = vadd.f32 1e-05, %v1257_v27 }
 0x345   :  { %1460 = vst [vmem:[#allocation7 + $0xa0] sm:$0xff] %v1428_v60  ;;  %v1398_v49 = vadd.f32 %v3052_v28, %v1359_v5  ;;  %v1322_v21 = vmul.f32 %v2249_v35, %v3007_v53  ;;  %2258 = vrsqrt.f32 %v1263_v45 }
 0x346   :  { %v1431_v26 = vmax.f32 %v1399_v40, 0.0  ;;  %v1362_v10 = vmul.f32 %v3046_v48, %v1323_v43  ;;  %2260 = vrsqrt.f32 %v1258_v4 }
 0x347   :  { %v2251_v15 = vpop.eup %2250  ;;  %v1430_v25 = vmax.f32 %v1398_v49, 0.0  ;;  %v1361_v50 = vmul.f32 %v3046_v48, %v1322_v21 }
 0x348   :  { %v2253_v20 = vpop.eup %2252  ;;  %1463 = vst [vmem:[#allocation7 + $0xb8] sm:$0xff] %v1431_v26  ;;  %v1401_v54 = vadd.f32 %v3052_v28, %v1362_v10  ;;  %v1325_v47 = vmul.f32 %v2251_v15, %v3014_v55 }
 0x349   :  { %1462 = vst [vmem:[#allocation7 + $0xb0] sm:$0xff] %v1430_v25  ;;  %v1400_v23 = vadd.f32 %v3052_v28, %v1361_v50  ;;  %v1324_v53 = vmul.f32 %v2253_v20, %v3017_v57 }
 0x34a   :  { %v1433_v58 = vmax.f32 %v1401_v54, 0.0  ;;  %v1364_v56 = vmul.f32 %v3046_v48, %v1325_v47 }
 0x34b   :  { %v2255_v39 = vpop.eup %2254  ;;  %v1432_v30 = vmax.f32 %v1400_v23, 0.0  ;;  %v1363_v63 = vmul.f32 %v3046_v48, %v1324_v53 }
 0x34c   :  { %v2257_v51 = vpop.eup %2256  ;;  %1465 = vst [vmem:[#allocation7 + $0xc8] sm:$0xff] %v1433_v58  ;;  %v1403_v31 = vadd.f32 %v3052_v28, %v1364_v56  ;;  %v1327_v17 = vmul.f32 %v2255_v39, %v3024_v0 }
 0x34d   :  { %1464 = vst [vmem:[#allocation7 + $0xc0] sm:$0xff] %v1432_v30  ;;  %v1402_v55 = vadd.f32 %v3052_v28, %v1363_v63  ;;  %v1326_v29 = vmul.f32 %v2257_v51, %v3027_v62 }
 0x34e   :  { %v1435_v3 = vmax.f32 %v1403_v31, 0.0  ;;  %v1366_v57 = vmul.f32 %v3046_v48, %v1327_v17 }
 0x34f   :  { %v2259_v61 = vpop.eup %2258  ;;  %v1434_v9 = vmax.f32 %v1402_v55, 0.0  ;;  %v1365_v34 = vmul.f32 %v3046_v48, %v1326_v29 }
 0x350   :  { %v2261_v12 = vpop.eup %2260  ;;  %1467 = vst [vmem:[#allocation7 + $0xd8] sm:$0xff] %v1435_v3  ;;  %v1405_v13 = vadd.f32 %v3052_v28, %v1366_v57  ;;  %v1329_v19 = vmul.f32 %v2259_v61, %v3034_v14 }
 0x351   :  { %1466 = vst [vmem:[#allocation7 + $0xd0] sm:$0xff] %v1434_v9  ;;  %v1404_v0 = vadd.f32 %v3052_v28, %v1365_v34  ;;  %v1328_v42 = vmul.f32 %v2261_v12, %v3037_v2 }
 0x352   :  { %v1437_v1 = vmax.f32 %v1405_v13, 0.0  ;;  %v1368_v62 = vmul.f32 %v3046_v48, %v1329_v19 }
 0x353   :  { %v1436_v7 = vmax.f32 %v1404_v0, 0.0  ;;  %v1367_v18 = vmul.f32 %v3046_v48, %v1328_v42 }
 0x354   :  { %1469 = vst [vmem:[#allocation7 + $0xe8] sm:$0xff] %v1437_v1  ;;  %v1407_v38 = vadd.f32 %v3052_v28, %v1368_v62 }
 0x355   :  { %1468 = vst [vmem:[#allocation7 + $0xe0] sm:$0xff] %v1436_v7  ;;  %v1406_v59 = vadd.f32 %v3052_v28, %v1367_v18 }
 0x356   :  { %v1439_v14 = vmax.f32 %v1407_v38, 0.0 }
 0x357   :  { %v1438_v36 = vmax.f32 %v1406_v59, 0.0 }
 0x358   :  { %1471 = vst [vmem:[#allocation7 + $0xf8] sm:$0xff] %v1439_v14 }
 0x359   :  { %1470 = vst [vmem:[#allocation7 + $0xf0] sm:$0xff] %v1438_v36 }
 0x35a   :  { %2317 = shalt.err (!%p2314_p6)
}
 0x35b   :  { %s2318_s12 = scalar_lea.hbm %s3172_s8, 4096 }
 0x35c   :  { %p2319_p7 = scmp.ne.s32.totalorder %s3172_s8, %s2318_s12  ;;  %p2322_p8 = scmp.lt.u32.totalorder %s2318_s12, %s3172_s8 }
 0x35e   :  { %p2324_p9 = pnand %p2322_p8, %p2319_p7 }
 0x360   :  { %2327 = shalt.err (!%p2324_p9)
}
 0x361   :  { %1483 = dma.vmem_to_hbm [thread:$0]  %s1478_s7, 4096, %s3172_s8, [#allocation4], %s2335_s15, %s2335_s15, %s2336_s16  }
 0x362   :  { %2332 = dma.done.wait [#allocation4], 4096  }
 0x363   :  { %2333 = vsyncadd [#allocation4], 4294963200 }
 0x364   :  { %1487 = vsyncpa [#allocation3], 1 }
 0x365   :  { %1488 = vsyncpa [#allocation6], 1 }
 0x366   :  { %1489 = vsyncpa [#allocation4], 1 }

</bundles_post_ra>
